<compile_context>
chip_gen: v7x
topology: tpu7x:2x2x1
jax: 0.10.0
libtpu: 0.0.40
codegen_flags: <defaults>
</compile_context>

<pallas_src>
import functools
import math

import jax
import jax.numpy as jnp
from jax.experimental import pallas as pl
from jax.experimental.pallas import tpu as pltpu


def _kps_label_map_kernel(row_ref, bins_ref, cls_ref, clsw_ref, reg_ref,
                          regw_ref, *, hw, gauss_threshold):
    """One grid step: `tnk` (batch, proposal, keypoint) rows x (H*W) bins.

    row_ref  : (tnk, 8)  packed per-row scalars
               [x0*gsx, y0*gsy, x0/r, y0/r, active, 0, 0, 0]
    bins_ref : (4, hw)   packed per-bin constants
               [(bx+off)*gsx, (by+off)*gsy, bx/r, by/r]
    cls_ref, clsw_ref : (tnk, hw)
    reg_ref, regw_ref : (tnk, 2*hw)  x maps in [:, :hw], y maps in [:, hw:]
    """
    row = row_ref[...]                        # (tnk, 8)
    sx0 = row[:, 0:1]                         # x0 * sqrt(1/(2*sigma_x^2))
    sy0 = row[:, 1:2]
    x0r = row[:, 2:3]                         # x0 / radius
    y0r = row[:, 3:4]
    act = row[:, 4:5] > 0.5                   # positive AND label-not-ignored

    sbx = bins_ref[0:1, :]                    # (bin_x + off) * gauss scale
    sby = bins_ref[1:2, :]
    bxr = bins_ref[2:3, :]                    # bin_x / radius
    byr = bins_ref[3:4, :]

    # get_score_map: gaussian around the projected keypoint center
    # (scales pre-folded in the wrapper, so only sub/mul/add/exp here).
    dx = sbx - sx0                            # (tnk, hw)
    dy = sby - sy0
    score = jnp.exp(-(dx * dx + dy * dy))

    # get_reg_map offsets (no bin_offset here, matching the PyTorch code).
    offx = x0r - bxr                          # (tnk, hw)
    offy = y0r - byr

    if gauss_threshold is not None:
        keep = score >= gauss_threshold
        any_keep = jnp.max(score, axis=-1, keepdims=True) >= gauss_threshold
    else:
        # dis >= 0 always holds (sum of squares), so the <= 1 test alone is
        # equivalent to the PyTorch (dis <= 1) & (dis >= 0) condition.
        dis = offx * offx + offy * offy
        keep = dis <= 1.0
        any_keep = jnp.min(dis, axis=-1, keepdims=True) <= 1.0

    # A row is written iff: positive proposal AND kp label not ignored (both
    # folded into `act` by the wrapper) AND at least one kept bin.
    active = jnp.logical_and(act, any_keep)                 # (tnk, 1)

    ones = jnp.ones_like(score)
    cls_ref[...] = jnp.where(active, score, -1.0)
    clsw_ref[...] = jnp.where(active, ones, 0.0).astype(clsw_ref.dtype)

    m = jnp.logical_and(active, keep)                       # (tnk, hw)
    w = jnp.where(m, ones, 0.0).astype(regw_ref.dtype)
    reg_ref[:, :hw] = jnp.where(m, offx, 0.0)
    reg_ref[:, hw:] = jnp.where(m, offy, 0.0)
    regw_ref[:, :hw] = w
    regw_ref[:, hw:] = w


def _prepare_rows_and_bins(boxes, gt_boxes, match_pos_flag, match_gt_id, *,
                           feat_h, feat_w, kps_num, ignore_labels,
                           roi_expand_param, sigma_x, sigma_y, bin_offset,
                           radius):
    """Cheap O(B*N*K) per-row prep + per-bin constants (shared w/ reference).

    Returns per-row (B, N, K) arrays (x0*gsx, y0*gsy, x0/r, y0/r, act) and
    per-bin (H*W,) arrays ((bx+off)*gsx, (by+off)*gsy, bx/r, by/r) with the
    gaussian / radius scales pre-folded (strength reduction for the kernel).
    """
    B, N = boxes.shape[:2]
    M = gt_boxes.shape[1]
    K, H, W = int(kps_num), int(feat_h), int(feat_w)
    HW = H * W

    boxes = boxes.astype(jnp.float32)
    gt_boxes = gt_boxes.astype(jnp.float32)

    # take_row(gt_boxes, match_gt_id); indices clipped (non-positive rows do
    # not influence the output anyway).
    idx = jnp.clip(match_gt_id.astype(jnp.int32), 0, M - 1)
    matched = jnp.take_along_axis(gt_boxes, idx[..., None], axis=1)  # (B,N,D)
    kps = matched[..., 4:4 + 3 * K].reshape(B, N, K, 3)
    kx, ky, klbl = kps[..., 0], kps[..., 1], kps[..., 2]

    # zoom_boxes(boxes, (r, r)): scale width/height about the box center.
    # TODO(synk): confirm hat.zoom_boxes w/h convention (no +1 assumed here;
    # identity at roi_expand_param == 1.0).
    x1, y1, x2, y2 = (boxes[..., i] for i in range(4))
    cx, cy = (x1 + x2) * 0.5, (y1 + y2) * 0.5
    half_w = (x2 - x1) * (roi_expand_param * 0.5)
    half_h = (y2 - y1) * (roi_expand_param * 0.5)
    zx1, zy1 = cx - half_w, cy - half_h
    zx2, zy2 = cx + half_w, cy + half_h

    scale_x = W / (zx2 - zx1 + 1.0)
    scale_y = H / (zy2 - zy1 + 1.0)
    x0 = (kx - zx1[..., None]) * scale_x[..., None]        # (B, N, K)
    y0 = (ky - zy1[..., None]) * scale_y[..., None]

    valid = jnp.ones((B, N, K), jnp.bool_)                 # filter_kps
    for lbl in ignore_labels:
        valid = jnp.logical_and(valid, klbl != float(lbl))
    act = jnp.logical_and(valid, (match_pos_flag > 0)[..., None])
    act = act.astype(jnp.float32)

    # Flattened bin grids, exactly replicating the registered torch buffers:
    # meshgrid(arange(feat_w), arange(feat_h)) flattened -> bin_x = p % H in
    # [0, H) and bin_y = p // H in [0, W).  This is the module's own
    # convention (including for H != W); the later view to (H, W) matches
    # torch's .view bit-for-bit.
    p = jnp.arange(HW, dtype=jnp.int32)
    bin_x = (p % H).astype(jnp.float32)
    bin_y = (p // H).astype(jnp.float32)

    gsx = 1.0 / (math.sqrt(2.0) * float(sigma_x))   # sqrt(1 / (2*sigma_x^2))
    gsy = 1.0 / (math.sqrt(2.0) * float(sigma_y))
    inv_r = 1.0 / float(radius)

    rows = (x0 * gsx, y0 * gsy, x0 * inv_r, y0 * inv_r, act)
    bins = ((bin_x + float(bin_offset)) * gsx,
            (bin_y + float(bin_offset)) * gsy,
            bin_x * inv_r,
            bin_y * inv_r)
    return rows, bins


def _pick_row_tile(rows, cap):
    """Pick a row-tile size.

    Prefers a tile that (a) divides `rows` (no padded-output slice copy),
    (b) fits the VMEM-derived `cap`, (c) is a multiple of 8 (sublane-friendly)
    or equal to the full row count, and (d) yields >= 2 grid steps so both
    v7x TensorCores get work.  Falls back to padding only when no reasonable
    divisor exists.  Returns (tile, needs_padding).
    """
    cap = max(8, min(int(cap), rows))
    if rows <= cap:
        # Whole problem fits one block; still prefer 2 grid steps for the two
        # v7x TensorCores when the split stays sublane-aligned.
        if rows % 2 == 0 and (rows // 2) % 8 == 0:
            return rows // 2, False
        return rows, False
    # rows > cap: largest divisor of rows that is a multiple of 8 and <= cap.
    best = 0
    d = 1
    while d * d <= rows:
        if rows % d == 0:
            for t in (d, rows // d):
                if t <= cap and t % 8 == 0:
                    best = max(best, t)
        d += 1
    if best * 4 >= cap:       # close enough to the cap: per-step overhead ok
        return best, False
    # No reasonable divisor: pad rows to a multiple of a cap-sized tile
    # (costs a post-kernel slice copy but avoids degenerate tiny steps).
    return (cap // 8) * 8, True


def rcnn_kps_label_from_match(boxes, gt_boxes, match_pos_flag, match_gt_id, *,
                              feat_h, feat_w, kps_num, ignore_labels,
                              roi_expand_param=1.0, gauss_threshold=0.6,
                              sigma_x=1.6, sigma_y=1.6, bin_offset=0.5,
                              radius=1.0, weight_dtype=jnp.bfloat16,
                              max_row_tile=2048):
    """JAX/Pallas equivalent of RCNNKPSLabelFromMatch.forward.

    Weight maps hold exactly 0.0 / 1.0, so emitting them as bfloat16 is
    lossless and cuts HBM write traffic; pass weight_dtype=jnp.float32 to
    match the PyTorch dtype exactly.
    """
    B, N, _ = boxes.shape
    K, H, W = int(kps_num), int(feat_h), int(feat_w)
    HW = H * W
    rows_total = B * N * K

    (sx0, sy0, x0r, y0r, act), (sbx, sby, bxr, byr) = _prepare_rows_and_bins(
        boxes, gt_boxes, match_pos_flag, match_gt_id, feat_h=feat_h,
        feat_w=feat_w, kps_num=kps_num, ignore_labels=ignore_labels,
        roi_expand_param=roi_expand_param, sigma_x=sigma_x, sigma_y=sigma_y,
        bin_offset=bin_offset, radius=radius)

    # Pack the five per-row scalars into one (rows, 8) array (one small DMA
    # per grid step instead of five 1-lane-wide blocks).
    zeros = jnp.zeros_like(act)
    row_pack = jnp.stack([sx0, sy0, x0r, y0r, act, zeros, zeros, zeros],
                         axis=-1).reshape(rows_total, 8)
    bins = jnp.stack([sbx, sby, bxr, byr], axis=0)          # (4, HW)

    # ---- generation-aware row tiling (VMEM-budget derived) ----------------
    wbytes = jax.dtypes.canonicalize_dtype(weight_dtype).itemsize
    bytes_per_row = 8 * 4 + HW * (4 + wbytes) + 2 * HW * (4 + wbytes)
    try:
        vmem_cap = int(pltpu.get_tpu_info().vmem_capacity_bytes)
    except Exception:                      # be safe off-TPU / older runtimes
        vmem_cap = 64 * 1024 * 1024        # v7x per-TensorCore floor
    vmem_limit = min(vmem_cap * 3 // 4, 96 * 1024 * 1024)
    # 2x double buffering on the pipelined blocks, and only use half the
    # scoped limit for them (headroom for compiler scratch).
    cap = max(8, min(int(max_row_tile),
                     (vmem_limit // 2) // (2 * bytes_per_row)))

    tnk, _needs_pad = _pick_row_tile(rows_total, cap)
    rows_padded = pl.cdiv(rows_total, tnk) * tnk
    if rows_padded != rows_total:
        # Padded rows carry act == 0 -> written as (-1, 0, 0, 0), sliced off.
        row_pack = jnp.pad(row_pack, ((0, rows_padded - rows_total), (0, 0)))

    kernel = functools.partial(
        _kps_label_map_kernel, hw=HW,
        gauss_threshold=(None if gauss_threshold is None
                         else float(gauss_threshold)))

    grid = (rows_padded // tnk,)
    row_spec = pl.BlockSpec((tnk, 8), lambda i: (i, 0))
    bin_spec = pl.BlockSpec((4, HW), lambda i: (0, 0))
    map_spec = pl.BlockSpec((tnk, HW), lambda i: (i, 0))
    reg_spec = pl.BlockSpec((tnk, 2 * HW), lambda i: (i, 0))

    cls, clsw, reg, regw = pl.pallas_call(
        kernel,
        grid=grid,
        in_specs=[row_spec, bin_spec],
        out_specs=(map_spec, map_spec, reg_spec, reg_spec),
        out_shape=(
            jax.ShapeDtypeStruct((rows_padded, HW), jnp.float32),
            jax.ShapeDtypeStruct((rows_padded, HW), weight_dtype),
            jax.ShapeDtypeStruct((rows_padded, 2 * HW), jnp.float32),
            jax.ShapeDtypeStruct((rows_padded, 2 * HW), weight_dtype),
        ),
        compiler_params=pltpu.CompilerParams(
            dimension_semantics=("parallel",),
            vmem_limit_bytes=int(vmem_limit)),
    )(row_pack, bins)

    if rows_padded != rows_total:
        cls, clsw = cls[:rows_total], clsw[:rows_total]
        reg, regw = reg[:rows_total], regw[:rows_total]

    # Metadata-only reshapes back to the module's output layout.
    return {
        "kps_cls_label": cls.reshape(B, N, K, H, W),
        "kps_cls_label_weight": clsw.reshape(B, N, K, H, W),
        "kps_reg_label": reg.reshape(B, N, 2 * K, H, W),
        "kps_reg_label_weight": regw.reshape(B, N, 2 * K, H, W),
    }


def _reference_jax(boxes, gt_boxes, match_pos_flag, match_gt_id, *,
                   feat_h, feat_w, kps_num, ignore_labels,
                   roi_expand_param=1.0, gauss_threshold=0.6,
                   sigma_x=1.6, sigma_y=1.6, bin_offset=0.5, radius=1.0):
    """Pure-JAX vectorized reference with the PyTorch forward semantics."""
    B, N = boxes.shape[:2]
    K, H, W = int(kps_num), int(feat_h), int(feat_w)

    (sx0, sy0, x0r, y0r, act), (sbx, sby, bxr, byr) = _prepare_rows_and_bins(
        boxes, gt_boxes, match_pos_flag, match_gt_id, feat_h=feat_h,
        feat_w=feat_w, kps_num=kps_num, ignore_labels=ignore_labels,
        roi_expand_param=roi_expand_param, sigma_x=sigma_x, sigma_y=sigma_y,
        bin_offset=bin_offset, radius=radius)

    dx = sbx - sx0[..., None]                 # (B, N, K, HW)
    dy = sby - sy0[..., None]
    score = jnp.exp(-(dx * dx + dy * dy))
    offx = x0r[..., None] - bxr
    offy = y0r[..., None] - byr

    if gauss_threshold is not None:
        keep = score >= gauss_threshold
    else:
        dis = offx * offx + offy * offy
        keep = jnp.logical_and(dis <= 1.0, dis >= 0.0)
    any_keep = jnp.any(keep, axis=-1, keepdims=True)
    active = jnp.logical_and(act[..., None] > 0.5, any_keep)

    cls = jnp.where(active, score, -1.0).reshape(B, N, K, H, W)
    clsw = jnp.broadcast_to(active, score.shape).astype(
        jnp.float32).reshape(B, N, K, H, W)
    m = jnp.logical_and(active, keep)
    rx = jnp.where(m, offx, 0.0)
    ry = jnp.where(m, offy, 0.0)
    rw = m.astype(jnp.float32)
    reg = jnp.stack([rx, ry], axis=3).reshape(B, N, 2 * K, H, W)
    regw = jnp.stack([rw, rw], axis=3).reshape(B, N, 2 * K, H, W)
    return cls, clsw, reg, regw


if __name__ == "__main__":
    B, N, M = 2, 8, 4
    K, H, W = 2, 16, 16
    ignore_labels = (0,)

    key = jax.random.PRNGKey(0)
    k1, k2, k3, k4, k5, k6, k7, k8, k9 = jax.random.split(key, 9)

    # Ground-truth boxes.
    gx1 = jax.random.uniform(k1, (B, M), minval=0.0, maxval=40.0)
    gy1 = jax.random.uniform(k2, (B, M), minval=0.0, maxval=40.0)
    gw = jax.random.uniform(k3, (B, M), minval=20.0, maxval=60.0)
    gh = jax.random.uniform(k4, (B, M), minval=20.0, maxval=60.0)
    gx2, gy2 = gx1 + gw, gy1 + gh

    # Keypoints inside each gt box; labels in {0,1,2} (0 is ignored).
    ku = jax.random.uniform(k5, (B, M, K, 2), minval=0.2, maxval=0.8)
    kpx = gx1[..., None] + ku[..., 0] * gw[..., None]
    kpy = gy1[..., None] + ku[..., 1] * gh[..., None]
    kpl = jax.random.randint(k6, (B, M, K), 0, 3).astype(jnp.float32)
    kps_cols = jnp.stack([kpx, kpy, kpl], axis=-1).reshape(B, M, 3 * K)

    gt_boxes = jnp.concatenate(
        [jnp.stack([gx1, gy1, gx2, gy2], axis=-1), kps_cols], axis=-1)

    match_gt_id = jax.random.randint(k7, (B, N), 0, M)
    match_pos_flag = jax.random.randint(k8, (B, N), -1, 2)   # {-1, 0, 1}

    # Predicted boxes near the matched gt boxes so projections land on-grid.
    matched_coords = jnp.take_along_axis(
        gt_boxes[..., :4], match_gt_id[..., None], axis=1)
    boxes = matched_coords + jax.random.normal(k9, (B, N, 4)) * 2.0

    out = rcnn_kps_label_from_match(
        boxes, gt_boxes, match_pos_flag, match_gt_id,
        feat_h=H, feat_w=W, kps_num=K, ignore_labels=ignore_labels,
        roi_expand_param=1.0, gauss_threshold=0.6)
    out = jax.block_until_ready(out)

    ref = _reference_jax(
        boxes, gt_boxes, match_pos_flag, match_gt_id,
        feat_h=H, feat_w=W, kps_num=K, ignore_labels=ignore_labels,
        roi_expand_param=1.0, gauss_threshold=0.6)

    names = ["kps_cls_label", "kps_cls_label_weight",
             "kps_reg_label", "kps_reg_label_weight"]
    for name, r in zip(names, ref):
        o = out[name].astype(jnp.float32)   # weights are lossless 0/1 in bf16
        assert o.shape == r.shape, (name, o.shape, r.shape)
        assert jnp.allclose(o, r, atol=1e-5, rtol=1e-5), name
    print("KERNEL_OK")
</pallas_src>

<mosaic_0001>
module attributes {stable_mosaic.version = 11 : i64} {
  func.func @_kps_label_map_kernel(%arg0: i32, %arg1: memref<16x8xf32, #tpu.memory_space<vmem>>, %arg2: memref<4x256xf32, #tpu.memory_space<vmem>>, %arg3: memref<16x256xf32, #tpu.memory_space<vmem>>, %arg4: memref<16x256xbf16, #tpu.memory_space<vmem>>, %arg5: memref<16x512xf32, #tpu.memory_space<vmem>>, %arg6: memref<16x512xbf16, #tpu.memory_space<vmem>>) attributes {dimension_semantics = [#tpu.dimension_semantics<parallel>], iteration_bounds = array<i64: 2>, scalar_prefetch = 0 : i64, scratch_operands = 0 : i64, tpu.core_type = #tpu.core_type<tc>, window_params = [{transform_indices = @transform_0, window_bounds = array<i64: 16, 8>}, {pipeline_mode = #tpu.pipeline_mode<synchronous>, transform_indices = @transform_1, window_bounds = array<i64: 4, 256>}, {transform_indices = @transform_2, window_bounds = array<i64: 16, 256>}, {transform_indices = @transform_3, window_bounds = array<i64: 16, 256>}, {transform_indices = @transform_4, window_bounds = array<i64: 16, 512>}, {transform_indices = @transform_5, window_bounds = array<i64: 16, 512>}]} {
    %c0 = arith.constant 0 : index
    %c0_0 = arith.constant 0 : index
    %0 = vector.load %arg1[%c0, %c0_0] : memref<16x8xf32, #tpu.memory_space<vmem>>, vector<16x8xf32>
    %1 = vector.extract_strided_slice %0 {offsets = [0, 0], sizes = [16, 1], strides = [1, 1]} : vector<16x8xf32> to vector<16x1xf32>
    %2 = vector.extract_strided_slice %0 {offsets = [0, 1], sizes = [16, 1], strides = [1, 1]} : vector<16x8xf32> to vector<16x1xf32>
    %3 = vector.extract_strided_slice %0 {offsets = [0, 2], sizes = [16, 1], strides = [1, 1]} : vector<16x8xf32> to vector<16x1xf32>
    %4 = vector.extract_strided_slice %0 {offsets = [0, 3], sizes = [16, 1], strides = [1, 1]} : vector<16x8xf32> to vector<16x1xf32>
    %5 = vector.extract_strided_slice %0 {offsets = [0, 4], sizes = [16, 1], strides = [1, 1]} : vector<16x8xf32> to vector<16x1xf32>
    %cst = arith.constant 5.000000e-01 : f32
    %6 = vector.broadcast %cst : f32 to vector<16x1xf32>
    %7 = arith.cmpf ogt, %5, %6 : vector<16x1xf32>
    %c0_1 = arith.constant 0 : index
    %c0_2 = arith.constant 0 : index
    %8 = vector.load %arg2[%c0_1, %c0_2] : memref<4x256xf32, #tpu.memory_space<vmem>>, vector<1x256xf32>
    %c1 = arith.constant 1 : index
    %c0_3 = arith.constant 0 : index
    %9 = vector.load %arg2[%c1, %c0_3] : memref<4x256xf32, #tpu.memory_space<vmem>>, vector<1x256xf32>
    %c2 = arith.constant 2 : index
    %c0_4 = arith.constant 0 : index
    %10 = vector.load %arg2[%c2, %c0_4] : memref<4x256xf32, #tpu.memory_space<vmem>>, vector<1x256xf32>
    %c3 = arith.constant 3 : index
    %c0_5 = arith.constant 0 : index
    %11 = vector.load %arg2[%c3, %c0_5] : memref<4x256xf32, #tpu.memory_space<vmem>>, vector<1x256xf32>
    %12 = vector.broadcast %8 : vector<1x256xf32> to vector<16x256xf32>
    %13 = vector.broadcast %1 : vector<16x1xf32> to vector<16x256xf32>
    %14 = arith.subf %12, %13 : vector<16x256xf32>
    %15 = vector.broadcast %9 : vector<1x256xf32> to vector<16x256xf32>
    %16 = vector.broadcast %2 : vector<16x1xf32> to vector<16x256xf32>
    %17 = arith.subf %15, %16 : vector<16x256xf32>
    %18 = arith.mulf %14, %14 : vector<16x256xf32>
    %19 = arith.mulf %17, %17 : vector<16x256xf32>
    %20 = arith.addf %18, %19 : vector<16x256xf32>
    %cst_6 = arith.constant 0.000000e+00 : f32
    %21 = vector.broadcast %cst_6 : f32 to vector<16x256xf32>
    %22 = arith.subf %21, %20 : vector<16x256xf32>
    %23 = math.exp %22 : vector<16x256xf32>
    %24 = vector.broadcast %3 : vector<16x1xf32> to vector<16x256xf32>
    %25 = vector.broadcast %10 : vector<1x256xf32> to vector<16x256xf32>
    %26 = arith.subf %24, %25 : vector<16x256xf32>
    %27 = vector.broadcast %4 : vector<16x1xf32> to vector<16x256xf32>
    %28 = vector.broadcast %11 : vector<1x256xf32> to vector<16x256xf32>
    %29 = arith.subf %27, %28 : vector<16x256xf32>
    %cst_7 = arith.constant 6.000000e-01 : f32
    %30 = vector.broadcast %cst_7 : f32 to vector<16x256xf32>
    %31 = arith.cmpf oge, %23, %30 : vector<16x256xf32>
    %cst_8 = arith.constant dense<0xFF800000> : vector<16xf32>
    %32 = vector.multi_reduction <maximumf>, %23, %cst_8 [1] : vector<16x256xf32> to vector<16xf32>
    %33 = vector.shape_cast %32 : vector<16xf32> to vector<16x1xf32>
    %cst_9 = arith.constant 6.000000e-01 : f32
    %34 = vector.broadcast %cst_9 : f32 to vector<16x1xf32>
    %35 = arith.cmpf oge, %33, %34 : vector<16x1xf32>
    %36 = arith.andi %7, %35 : vector<16x1xi1>
    %cst_10 = arith.constant 1.000000e+00 : f32
    %37 = vector.broadcast %cst_10 : f32 to vector<16x256xf32>
    %cst_11 = arith.constant -1.000000e+00 : f32
    %38 = vector.shape_cast %36 : vector<16x1xi1> to vector<16x1xi1>
    %39 = vector.broadcast %38 : vector<16x1xi1> to vector<16x256xi1>
    %40 = vector.broadcast %cst_11 : f32 to vector<16x256xf32>
    %41 = arith.select %39, %23, %40 : vector<16x256xi1>, vector<16x256xf32>
    %c0_12 = arith.constant 0 : index
    %c0_13 = arith.constant 0 : index
    %42 = vector.load %arg3[%c0_12, %c0_13] : memref<16x256xf32, #tpu.memory_space<vmem>>, vector<16x256xf32>
    tpu.vector_store %arg3[%c0_12, %c0_13], %41 {strides = array<i32>} : memref<16x256xf32, #tpu.memory_space<vmem>>, vector<16x256xf32>,
    %cst_14 = arith.constant 0.000000e+00 : f32
    %43 = vector.shape_cast %36 : vector<16x1xi1> to vector<16x1xi1>
    %44 = vector.broadcast %43 : vector<16x1xi1> to vector<16x256xi1>
    %45 = vector.broadcast %cst_14 : f32 to vector<16x256xf32>
    %46 = arith.select %44, %37, %45 : vector<16x256xi1>, vector<16x256xf32>
    %47 = arith.truncf %46 : vector<16x256xf32> to vector<16x256xbf16>
    %c0_15 = arith.constant 0 : index
    %c0_16 = arith.constant 0 : index
    %48 = vector.load %arg4[%c0_15, %c0_16] : memref<16x256xbf16, #tpu.memory_space<vmem>>, vector<16x256xbf16>
    tpu.vector_store %arg4[%c0_15, %c0_16], %47 {strides = array<i32>} : memref<16x256xbf16, #tpu.memory_space<vmem>>, vector<16x256xbf16>,
    %49 = vector.broadcast %36 : vector<16x1xi1> to vector<16x256xi1>
    %50 = arith.andi %49, %31 : vector<16x256xi1>
    %cst_17 = arith.constant 0.000000e+00 : f32
    %51 = vector.broadcast %cst_17 : f32 to vector<16x256xf32>
    %52 = arith.select %50, %37, %51 : vector<16x256xi1>, vector<16x256xf32>
    %53 = arith.truncf %52 : vector<16x256xf32> to vector<16x256xbf16>
    %cst_18 = arith.constant 0.000000e+00 : f32
    %54 = vector.broadcast %cst_18 : f32 to vector<16x256xf32>
    %55 = arith.select %50, %26, %54 : vector<16x256xi1>, vector<16x256xf32>
    %c0_19 = arith.constant 0 : index
    %c0_20 = arith.constant 0 : index
    %56 = vector.load %arg5[%c0_19, %c0_20] : memref<16x512xf32, #tpu.memory_space<vmem>>, vector<16x256xf32>
    tpu.vector_store %arg5[%c0_19, %c0_20], %55 {strides = array<i32>} : memref<16x512xf32, #tpu.memory_space<vmem>>, vector<16x256xf32>,
    %cst_21 = arith.constant 0.000000e+00 : f32
    %57 = vector.broadcast %cst_21 : f32 to vector<16x256xf32>
    %58 = arith.select %50, %29, %57 : vector<16x256xi1>, vector<16x256xf32>
    %c0_22 = arith.constant 0 : index
    %c256 = arith.constant 256 : index
    %59 = vector.load %arg5[%c0_22, %c256] : memref<16x512xf32, #tpu.memory_space<vmem>>, vector<16x256xf32>
    tpu.vector_store %arg5[%c0_22, %c256], %58 {strides = array<i32>} : memref<16x512xf32, #tpu.memory_space<vmem>>, vector<16x256xf32>,
    %c0_23 = arith.constant 0 : index
    %c0_24 = arith.constant 0 : index
    %60 = vector.load %arg6[%c0_23, %c0_24] : memref<16x512xbf16, #tpu.memory_space<vmem>>, vector<16x256xbf16>
    tpu.vector_store %arg6[%c0_23, %c0_24], %53 {strides = array<i32>} : memref<16x512xbf16, #tpu.memory_space<vmem>>, vector<16x256xbf16>,
    %c0_25 = arith.constant 0 : index
    %c256_26 = arith.constant 256 : index
    %61 = vector.load %arg6[%c0_25, %c256_26] : memref<16x512xbf16, #tpu.memory_space<vmem>>, vector<16x256xbf16>
    tpu.vector_store %arg6[%c0_25, %c256_26], %53 {strides = array<i32>} : memref<16x512xbf16, #tpu.memory_space<vmem>>, vector<16x256xbf16>,
    return
  }
  func.func @transform_0(%arg0: i32) -> (i32, i32) {
    %c0_i32 = arith.constant 0 : i32
    %c0_i32_0 = arith.constant 0 : i32
    return %arg0, %c0_i32 : i32, i32
  }
  func.func @transform_1(%arg0: i32) -> (i32, i32) {
    %c0_i32 = arith.constant 0 : i32
    %c0_i32_0 = arith.constant 0 : i32
    %c0_i32_1 = arith.constant 0 : i32
    return %c0_i32, %c0_i32_0 : i32, i32
  }
  func.func @transform_2(%arg0: i32) -> (i32, i32) {
    %c0_i32 = arith.constant 0 : i32
    %c0_i32_0 = arith.constant 0 : i32
    return %arg0, %c0_i32 : i32, i32
  }
  func.func @transform_3(%arg0: i32) -> (i32, i32) {
    %c0_i32 = arith.constant 0 : i32
    %c0_i32_0 = arith.constant 0 : i32
    return %arg0, %c0_i32 : i32, i32
  }
  func.func @transform_4(%arg0: i32) -> (i32, i32) {
    %c0_i32 = arith.constant 0 : i32
    %c0_i32_0 = arith.constant 0 : i32
    return %arg0, %c0_i32 : i32, i32
  }
  func.func @transform_5(%arg0: i32) -> (i32, i32) {
    %c0_i32 = arith.constant 0 : i32
    %c0_i32_0 = arith.constant 0 : i32
    return %arg0, %c0_i32 : i32, i32
  }
}

</mosaic_0001>

<bundles_post_ra>
// kernel: tpu_custom_call.1
= control target key start
LH: loop header
LB: loop body
LE: loop exit
PB: predicated region body
PF: predicated region fallthrough
CT: control target
= control target key end

     0   :  { %s1432_s0 = inlined_call_operand.vmem [shape: f32[32,8], index: 0, kind: input, shape index: {}]   ;;  %s1433_s1 = inlined_call_operand.vmem [shape: f32[4,256], index: 1, kind: input, shape index: {}]   ;;  %s1434_s2 = inlined_call_operand.hbm [shape: f32[32,256], index: 2, kind: output, shape index: {0}]   ;;  %s1435_s3 = inlined_call_operand.hbm [shape: bf16[32,256], index: 3, kind: output, shape index: {1}]   ;;  %s1436_s4 = inlined_call_operand.hbm [shape: f32[32,512], index: 4, kind: output, shape index: {2}]   ;;  %s1437_s5 = inlined_call_operand.hbm [shape: bf16[32,512], index: 5, kind: output, shape index: {3}]  }
   0x1   :  { %1441 = sst [smem:[#allocation12_spill]] %s1432_s0 }
   0x2   :  { %11 = vsyncpa [#allocation3], 0 }
   0x3   :  { %13 = vsyncpa [#allocation3 + $0x1], 0 }
   0x4   :  { %14 = vsyncpa [#allocation5], 0 }
   0x5   :  { %16 = vsyncpa [#allocation5 + $0x1], 0 }
   0x6   :  { %17 = vsyncpa [#allocation8], 0 }
   0x7   :  { %19 = vsyncpa [#allocation8 + $0x1], 0  ;;  %s1046_s18 = smov 0   ;;  %s1048_s19 = smov 0  }
   0x8   :  { %s1050_s20 = smov 0   ;;  %s1052_s21 = smov 0  }
   0x9 LB: > { %s1067_s22 = sadd.s32 4294967295, %s996_s21   ;;  %s1438_s23 = sadd.s32 4294967294, %s996_s21   ;;  %s996_s21 = sphi %s1052_s21, %s1459_s21   ;;  %s992_s20 = sphi %s1050_s20, %s1458_s20   ;;  %s988_s19 = sphi %s1048_s19, %s1457_s19   ;;  %s984_s18 = sphi %s1046_s18, %s1456_s18  }
   0xa   : > { %s1071_s24 = sadd.s32 1, %s996_s21   ;;  %s79_s25 = sadd.s32 1, %s992_s20 }
   0xb   : > { %s76_s26 = ssub.s32 %s996_s21, %s1071_s24  ;;  %p89_p0 = scmp.ne.s32.totalorder %s992_s20, %s988_s19 }
   0xc   : > { %p77_p1 = scmp.eq.s32.totalorder %s76_s26, 0  ;;  %p90_p2 = scmp.eq.s32.totalorder %s1067_s22, 1 }
   0xd   : > { %p95_p3 = scmp.ne.s32.totalorder %s988_s19, %s984_s18  ;;  %p96_p4 = scmp.eq.s32.totalorder %s1438_s23, 1 }
   0xe   : > { %s1084_s27 = scalar_select %p77_p1, %s992_s20, %s79_s25  }
   0xf   : > { %p1086_p5 = por %p90_p2, %p89_p0  ;;  %p1090_p6 = por %p96_p4, %p95_p3 }
  0x10   : > { %p719_p7 = scmp.ge.s32.totalorder %s996_s21, 1  ;;  %p204_p8 = scmp.lt.s32.totalorder %s996_s21, 3 }
  0x12   : > { %p205_p9 = pnand %p719_p7, %p204_p8 }
  0x13   : > { %s724_s30 = sshll.u32 (!%p205_p9), %s1067_s22, 1  ;;  %v998_v0 = vmov (!%p205_p9), 1   ;;  %v999_v1 = vmov (!%p205_p9), 0   ;;  %s1444_s0 = sld [smem:[#allocation12_spill]] (!%p205_p9)  ;;  %v1000_v4 = vmov (!%p205_p9), 2   ;;  %v269_v5 = vlaneseq (!%p205_p9) }
  0x14   : > { %208 = sbr.rel (%p205_p9) target bundleno = 555 (0x22b), region = 28  ;;  %828 = vset.pattern.permute.xlu1 (!%p205_p9), %v998_v0  ;;  %827 = vset.pattern.permute.xlu0 (!%p205_p9), %v999_v1  ;;  %p248_p10 = scmp.lt.s32.totalorder (!%p205_p9), %s724_s30, 3  ;;  %v726_v9 = vld [vmem:[%s1433_s1 + $0x1] ss:$4 sm:$0x3] (!%p205_p9)  ;;  %v1001_v53 = vmov (!%p205_p9), 4  }
  0x15   : > { %v1109_v6 = vshrl.u32 (!%p205_p9), %v269_v5, 7  ;;  %v261_v10 = vld [vmem:[%s1433_s1] ss:$4 sm:$0x3] (!%p205_p9)  ;;  %v1002_v54 = vmov (!%p205_p9), 3   ;;  %s1148_s14 = sand.u32 (!%p205_p9), 1, %s988_s19  }
  0x16   : > { %v728_v61 = vld [vmem:[%s1433_s1 + $0x3] ss:$4 sm:$0x3] (!%p205_p9)  ;;  %v727_v62 = vld [vmem:[%s1433_s1 + $0x2] ss:$4 sm:$0x3] (!%p205_p9) }
  0x17   : > { %v1112_v7 = vsub.s32 (!%p205_p9), 0, %v1109_v6  ;;  %v1115_v8 = vsub.s32 (!%p205_p9), 1, %v1109_v6  ;;  %s722_s26 = sshll.u32 (!%p205_p9), %s1148_s14, 6  ;;  %s754_s10 = sshll.u32 (!%p205_p9), %s1067_s22, 8 }
  0x18   : > { %s1173_s7 = scalar_lea.vmem (!%p205_p9), [#allocation6], %s722_s26  ;;  %s1439_s13 = sshll.u32 (!%p205_p9), %s1067_s22, 9 }
  0x19   : > { %v297_v11 = vrot.slane (!%p205_p9), %v726_v9, %v1112_v7  ;;  %v301_v12 = vrot.slane (!%p205_p9), %v726_v9, %v1115_v8  ;;  %v272_v13 = vrot.slane (!%p205_p9), %v261_v10, %v1112_v7  ;;  %v276_v14 = vrot.slane (!%p205_p9), %v261_v10, %v1115_v8  ;;  %s544_s8 = sshll.u32 (!%p205_p9), %s1173_s7, 4  ;;  %s1203_s17 = scalar_lea.hbm (!%p205_p9), %s1435_s3, %s754_s10  ;;  %s1188_s8 = int_to_ptr.vmem [resolvable:$true] %s544_s8 }
  0x1a   : > { %v1160_v63 = vrot.slane (!%p205_p9), %v728_v61, %v1112_v7  ;;  %v1164_v0 = vrot.slane (!%p205_p9), %v728_v61, %v1115_v8  ;;  %v1171_v5 = vrot.slane (!%p205_p9), %v727_v62, %v1115_v8  ;;  %v1004_v9 = vmov (!%p205_p9), 1985246804   ;;  %s1224_s15 = scalar_lea.hbm (!%p205_p9), %s1434_s2, %s1439_s13  ;;  %s1006_s23 = smov (!%p205_p9), [#allocation2]  }
  0x1b   : > { %s1461_s30 = smov (!%p248_p10, %s724_s30), 3  ;;  %v430_v10 = vunpack.c.l.s4 %v1004_v9 }
  0x1c   : > { %s725_s6 = sshll.u32 %s1461_s30, 3  ;;  %s720_s30 = sshll.u32 %s1148_s14, 5 }
  0x1d   : > { %s251_s9 = scalar_lea.vmem %s1444_s0, %s725_s6  ;;  %s721_s6 = sshll.u32 %s1148_s14, 4 }
  0x1e   : > { %v1101_v2 = vld [vmem:[%s251_s9] sm:$0xff]  ;;  %v1105_v3 = vld [vmem:[%s251_s9 + $0x8] sm:$0xff]  ;;  %s1185_s11 = scalar_lea.vmem [#allocation2], %s720_s30  ;;  %s1207_s25 = scalar_lea.vmem [#allocation4], %s721_s6 }
  0x1f   : > { %305 = vperm.xlu1 %828, %v1101_v2   ;;  %281 = vperm.xlu0 %827, %v1101_v2   ;;  %vm259_vm0 = vcmp.gt.f32.partialorder %v1101_v2, 0.5  ;;  %vm260_vm3 = vcmp.gt.f32.partialorder %v1105_v3, 0.5  ;;  %s510_s12 = sshll.u32 %s1185_s11, 4  ;;  %s527_s26 = sshll.u32 %s1207_s25, 4  ;;  %s1228_s12 = int_to_ptr.vmem [resolvable:$true] %s510_s12  ;;  %s1256_s26 = int_to_ptr.vmem [resolvable:$true] %s527_s26 }
  0x20   : > { %s1240_s16 = scalar_lea.vmem [#allocation7], %s720_s30  ;;  %s842_s10 = scalar_lea.vmem %s1228_s12, 512 }
  0x21   : > { %p843_p11 = scmp.ne.s32.totalorder %s1228_s12, %s842_s10  ;;  %s846_s9 = sshll.u32 %s1006_s23, 4  ;;  %s847_s9 = int_to_ptr.vmem [resolvable:$false] %s846_s9 }
  0x22   : > { %s848_s13 = scalar_lea.vmem %s847_s9, 1024  ;;  %p849_p0 = scmp.lt.s32.totalorder %s1228_s12, %s847_s9 }
  0x23   : > { %309 = vperm.xlu1 %828, %v1105_v3   ;;  %286 = vperm.xlu0 %827, %v1105_v3   ;;  %p844_p12 = pnand %p843_p11, %p1086_p5  ;;  %p850_p1 = scmp.lt.s32.totalorder %s848_s13, %s842_s10 }
  0x25   : > { %p845_p13 = pneg %p844_p12  ;;  %p851_p2 = por %p850_p1, %p849_p0 }
  0x27   : > { %830 = vset.pattern.permute.xlu1 %v1000_v4  ;;  %829 = vset.pattern.permute.xlu0 %v1001_v53  ;;  %p852_p3 = pnand %p851_p2, %p845_p13 }
  0x9e   : > { %v306_v15 = vpop.permute.xlu1 %305  ;;  %v282_v16 = vpop.permute.xlu0 %281 }
  0x9f   : > { %v312_v17 = vsub.f32 %v297_v11, %v306_v15  ;;  %v313_v18 = vsub.f32 %v301_v12, %v306_v15  ;;  %v289_v19 = vsub.f32 %v272_v13, %v282_v16  ;;  %v290_v20 = vsub.f32 %v276_v14, %v282_v16 }
  0xa1   : > { %v320_v21 = vmul.f32 %v312_v17, %v312_v17  ;;  %v321_v22 = vmul.f32 %v313_v18, %v313_v18  ;;  %v316_v23 = vmul.f32 %v289_v19, %v289_v19  ;;  %v317_v24 = vmul.f32 %v290_v20, %v290_v20 }
  0xa2   : > { %v310_v25 = vpop.permute.xlu1 %309  ;;  %v287_v26 = vpop.permute.xlu0 %286  ;;  %v431_v17 = vunpack.c.0.s8 %v430_v10  ;;  %v1005_v18 = vmov 0.0  }
  0xa3   : > { %v324_v27 = vadd.f32 %v320_v21, %v316_v23  ;;  %v325_v28 = vadd.f32 %v321_v22, %v317_v24  ;;  %v314_v29 = vsub.f32 %v297_v11, %v310_v25  ;;  %v315_v30 = vsub.f32 %v301_v12, %v310_v25 }
  0xa4   : > { %v291_v31 = vsub.f32 %v272_v13, %v287_v26  ;;  %v292_v32 = vsub.f32 %v276_v14, %v287_v26 }
  0xa5   : > { %v328_v33 = vsub.f32 0.0, %v324_v27  ;;  %v329_v34 = vsub.f32 0.0, %v325_v28  ;;  %v322_v35 = vmul.f32 %v314_v29, %v314_v29  ;;  %v323_v36 = vmul.f32 %v315_v30, %v315_v30 }
  0xa6   : > { %v318_v37 = vmul.f32 %v291_v31, %v291_v31  ;;  %v319_v38 = vmul.f32 %v292_v32, %v292_v32  ;;  %v1235_v30 = vsub.s32 %v431_v17, %v1109_v6 }
  0xa7   : > { %v332_v39 = vmul.f32 1.442695, %v328_v33  ;;  %v334_v40 = vmul.f32 1.442695, %v329_v34 }
  0xa8   : > { %v326_v41 = vadd.f32 %v322_v35, %v318_v37  ;;  %v327_v42 = vadd.f32 %v323_v36, %v319_v38 }
  0xa9   : > { %834 = vpow2.f32 %v332_v39 }
  0xaa   : > { %836 = vpow2.f32 %v334_v40  ;;  %v330_v43 = vsub.f32 0.0, %v326_v41  ;;  %v331_v44 = vsub.f32 0.0, %v327_v42 }
  0xac   : > { %v336_v45 = vmul.f32 1.442695, %v330_v43  ;;  %v338_v46 = vmul.f32 1.442695, %v331_v44 }
  0xae   : > { %838 = vpow2.f32 %v336_v45 }
  0xaf   : > { %840 = vpow2.f32 %v338_v46 }
  0xb3   : > { %v1127_v47 = vpop.eup %834 }
  0xb4   : > { %v1129_v48 = vpop.eup %836  ;;  %vm386_vm6 = vcmp.ge.f32.partialorder %v1127_v47, 0.6 }
  0xb5   : > { %v390_v49 = vmax.f32 %v1127_v47, %v1129_v48  ;;  %vm387_vm7 = vcmp.ge.f32.partialorder %v1129_v48, 0.6 }
  0xb7   : > { %391 = vmax.xlane.f32.xlu0 %v390_v49 }
  0xb8   : > { %v1133_v50 = vpop.eup %838 }
  0xb9   : > { %v1135_v51 = vpop.eup %840  ;;  %vm388_vm12 = vcmp.ge.f32.partialorder %v1133_v50, 0.6 }
  0xba   : > { %v393_v52 = vmax.f32 %v1133_v50, %v1135_v51  ;;  %vm389_vm11 = vcmp.ge.f32.partialorder %v1135_v51, 0.6 }
  0xbc   : > { %394 = vmax.xlane.f32.xlu1 %v393_v52 }
  0xcd   : > { %341 = vperm.xlu1 %830, %v1101_v2  }
  0xd1   : > { %345 = vperm.xlu1 %830, %v1105_v3  }
  0xd5   : > { %831 = vset.pattern.permute.xlu1 %v1002_v54 }
  0xd6   : > { %364 = vperm.xlu1 %831, %v1101_v2   ;;  %v1167_v2 = vrot.slane %v727_v62, %v1112_v7 }
  0xda   : > { %832 = vset.pattern.permute.xlu1 %v1001_v53 }
 0x144   : > { %v392_v55 = vpop.xlane.xlu0 %391 }
 0x145   : > { %vm396_vm1 = vcmp.ge.f32.partialorder %v392_v55, 0.6 }
 0x146   : > { %vm398_vm2 = vmand %vm259_vm0, %vm396_vm1 }
 0x147   : > { %v400_v56 = vsel %vm398_vm2, 1, %v999_v1 }
 0x148   : > { %403 = vperm.xlu0 %829, %v400_v56  }
 0x149   : > { %v395_v57 = vpop.xlane.xlu1 %394 }
 0x14a   : > { %vm397_vm4 = vcmp.ge.f32.partialorder %v395_v57, 0.6 }
 0x14b   : > { %vm399_vm5 = vmand %vm260_vm3, %vm397_vm4 }
 0x14c   : > { %v401_v58 = vsel %vm399_vm5, 1, %v999_v1 }
 0x14d   : > { %406 = vperm.xlu1 %832, %v401_v58   ;;  %v342_v59 = vpop.permute.xlu1 %341 }
 0x14e   : > { %v359_v13 = vsub.f32 %v342_v59, %v1167_v2  ;;  %v360_v14 = vsub.f32 %v342_v59, %v1171_v5 }
 0x151   : > { %833 = vset.pattern.permute.xlu1 %v1002_v54  ;;  %v1150_v60 = vpop.permute.xlu1 %345 }
 0x152   : > { %368 = vperm.xlu1 %833, %v1105_v3   ;;  %v1003_v3 = vmov 839922192   ;;  %v361_v28 = vsub.f32 %v1150_v60, %v1167_v2  ;;  %v362_v29 = vsub.f32 %v1150_v60, %v1171_v5 }
 0x153   : > { %v423_v4 = vunpack.c.l.s4 %v1003_v3 }
 0x155   : > { %v365_v1 = vpop.permute.xlu1 %364  ;;  %v424_v8 = vunpack.c.0.s8 %v423_v4 }
 0x156   : > { %v382_v11 = vsub.f32 %v365_v1, %v1160_v63  ;;  %v383_v12 = vsub.f32 %v365_v1, %v1164_v0 }
 0x157   : > { %v1215_v26 = vsub.s32 %v424_v8, %v1109_v6 }
 0x1c7   : > { %v404_v7 = vpop.permute.xlu0 %403 }
 0x1c8   : > { %vm408_vm8 = vcmp.eq.s32.totalorder %v404_v7, 1 }
 0x1c9   : > { %v410_v15 = vsel %vm408_vm8, %v1127_v47, -1.0  ;;  %v411_v16 = vsel %vm408_vm8, %v1129_v48, -1.0  ;;  %vm440_vm9 = vmand %vm408_vm8, %vm386_vm6  ;;  %v418_v31 = vsel %vm408_vm8, 1.0, %v1005_v18 }
 0x1ca   : > { %414 = vst [vmem:[%s1185_s11] sm:$0xff] %v410_v15  ;;  %415 = vst [vmem:[%s1185_s11 + $0x8] sm:$0xff] %v411_v16  ;;  %v444_v19 = vsel %vm440_vm9, 1.0, %v1005_v18  ;;  %v450_v20 = vsel %vm440_vm9, %v359_v13, 0.0  ;;  %v458_v21 = vsel %vm440_vm9, %v382_v11, 0.0 }
 0x1cb   : > { %vm441_vm10 = vmand %vm408_vm8, %vm387_vm7  ;;  %454 = vst [vmem:[%s1173_s7] sm:$0xff] %v450_v20 }
 0x1cc   : > { %v445_v22 = vsel %vm441_vm10, 1.0, %v1005_v18  ;;  %v451_v23 = vsel %vm441_vm10, %v360_v14, 0.0  ;;  %v459_v24 = vsel %vm441_vm10, %v383_v12, 0.0  ;;  %462 = vst [vmem:[%s1173_s7 + $0x10] sm:$0xff] %v458_v21  ;;  %v407_v27 = vpop.permute.xlu1 %406 }
 0x1cd   : > { %455 = vst [vmem:[%s1173_s7 + $0x8] sm:$0xff] %v451_v23  ;;  %463 = vst [vmem:[%s1173_s7 + $0x18] sm:$0xff] %v459_v24  ;;  %v749_v25 = vpack.c.bf16 %v445_v22, %v444_v19  ;;  %vm409_vm13 = vcmp.eq.s32.totalorder %v407_v27, 1 }
 0x1ce   : > { %v412_v32 = vsel %vm409_vm13, %v1133_v50, -1.0  ;;  %v413_v6 = vsel %vm409_vm13, %v1135_v51, -1.0  ;;  %v419_v33 = vsel %vm409_vm13, 1.0, %v1005_v18  ;;  %vm1252_vm14 = vmand %vm409_vm13, %vm389_vm11 }
 0x1cf   : > { %476 = vst [vmem:[%s1240_s16] sm:$0xff] %v749_v25  ;;  %478 = vst [vmem:[%s1240_s16 + $0x8] sm:$0xff] %v749_v25  ;;  %v420_v35 = vpack.c.bf16 %v419_v33, %v418_v31  ;;  %v447_v36 = vsel %vm1252_vm14, 1.0, %v1005_v18  ;;  %v453_v37 = vsel %vm1252_vm14, %v362_v29, 0.0 }
 0x1d0   : > { %416 = vst [vmem:[%s1185_s11 + $0x10] sm:$0xff] %v412_v32  ;;  %417 = vst [vmem:[%s1185_s11 + $0x18] sm:$0xff] %v413_v6 }
 0x1d1   : > { %vm1267_vm15 = vmand %vm409_vm13, %vm388_vm12  ;;  %457 = vst [vmem:[%s1173_s7 + $0x28] sm:$0xff] %v453_v37 }
 0x1d2   : > { %v446_v39 = vsel %vm1267_vm15, 1.0, %v1005_v18  ;;  %v452_v40 = vsel %vm1267_vm15, %v361_v28, 0.0 }
 0x1d3   : > { %855 = shalt.err (!%p852_p3)
}
 0x1d4   : > { %s856_s30 = scalar_lea.hbm %s1224_s15, 512  ;;  %s860_s23 = scalar_lea.hbm %s1434_s2, 1024 }
 0x1d5   : > { %p857_p4 = scmp.ne.s32.totalorder %s1224_s15, %s856_s30  ;;  %p861_p9 = scmp.lt.u32.totalorder %s1224_s15, %s1434_s2 }
 0x1d6   : > { %p862_p10 = scmp.lt.u32.totalorder %s860_s23, %s856_s30  ;;  %p864_p12 = scmp.lt.u32.totalorder %s856_s30, %s1224_s15 }
 0x1d7   : > { %p858_p7 = pnand %p857_p4, %p1086_p5 }
 0x1d8   : > { %p863_p11 = por %p862_p10, %p861_p9 }
 0x1d9   : > { %p859_p8 = pneg %p858_p7 }
 0x1da   : > { %p865_p13 = por %p864_p12, %p863_p11 }
 0x1dc   : > { %p866_p0 = pnand %p865_p13, %p859_p8 }
 0x1de   : > { %869 = shalt.err (!%p866_p0)
}
 0x1df   : > { %s1440_s13 = smov 256   ;;  %s1008_s0 = smov 16   ;;  %v428_v41 = vrot.slane %v420_v35, %v1215_v26  ;;  %v435_v42 = vrot.slane %v420_v35, %v1235_v30  ;;  %v369_v43 = vpop.permute.xlu1 %368  ;;  %456 = vst [vmem:[%s1173_s7 + $0x20] sm:$0xff] %v452_v40  ;;  %v750_v44 = vpack.c.bf16 %v447_v36, %v446_v39 }
 0x1e0   : > { %s1449_s30 = scalar_lea.sflag [#allocation3], %s1148_s14  ;;  %v384_v45 = vsub.f32 %v369_v43, %v1160_v63  ;;  %v385_v46 = vsub.f32 %v369_v43, %v1164_v0  ;;  %s1450_s6 = sshll.u32 %s1067_s22, 9 }
 0x1e1   : > { %759 = dma.vmem_to_hbm [thread:$0]  (%p1086_p5), %s1228_s12, 512, %s1224_s15, %s1449_s30, %s1440_s13, %s1440_s13, %s1008_s0  }
 0x1e2   : > { %s1315_s12 = scalar_lea.hbm %s1437_s5, %s1450_s6  ;;  %s1451_s15 = sshll.u32 %s1240_s16, 4  ;;  %477 = vst [vmem:[%s1240_s16 + $0x10] sm:$0xff] %v750_v44  ;;  %479 = vst [vmem:[%s1240_s16 + $0x18] sm:$0xff] %v750_v44  ;;  %v460_v47 = vsel %vm1267_vm15, %v384_v45, 0.0  ;;  %v461_v48 = vsel %vm1252_vm14, %v385_v46, 0.0  ;;  %s1319_s15 = int_to_ptr.vmem [resolvable:$true] %s1451_s15 }
 0x1e3   : > { %438 = vst [vmem:[%s1207_s25] sm:$0xff] %v428_v41  ;;  %439 = vst [vmem:[%s1207_s25 + $0x8] sm:$0xff] %v435_v42  ;;  %s1452_s23 = sshll.u32 %s1067_s22, 10  ;;  %s1453_s6 = sand.u32 1, %s1067_s22  }
 0x1e4   : > { %s1330_s13 = scalar_lea.hbm %s1436_s4, %s1452_s23  ;;  %s1338_s11 = scalar_lea.sflag [#allocation5], %s1453_s6 }
 0x1e5   : > { %s870_s10 = scalar_lea.vmem %s1256_s26, 256  ;;  %s1009_s25 = smov [#allocation4]  }
 0x1e6   : > { %p871_p1 = scmp.ne.s32.totalorder %s1256_s26, %s870_s10  ;;  %s874_s16 = sshll.u32 %s1009_s25, 4  ;;  %s875_s16 = int_to_ptr.vmem [resolvable:$false] %s874_s16 }
 0x1e7   : > { %s876_s9 = scalar_lea.vmem %s875_s16, 512  ;;  %p877_p4 = scmp.lt.s32.totalorder %s1256_s26, %s875_s16 }
 0x1e8   : > { %p872_p2 = pnand %p871_p1, %p1086_p5  ;;  %p878_p7 = scmp.lt.s32.totalorder %s876_s9, %s870_s10 }
 0x1ea   : > { %p873_p3 = pneg %p872_p2  ;;  %p879_p8 = por %p878_p7, %p877_p4 }
 0x1ec   : > { %p880_p9 = pnand %p879_p8, %p873_p3 }
 0x1ee   : > { %883 = shalt.err (!%p880_p9)
}
 0x1ef   : > { %s884_s22 = scalar_lea.hbm %s1203_s17, 256  ;;  %s888_s6 = scalar_lea.hbm %s1435_s3, 512 }
 0x1f0   : > { %p885_p10 = scmp.ne.s32.totalorder %s1203_s17, %s884_s22  ;;  %p889_p13 = scmp.lt.u32.totalorder %s1203_s17, %s1435_s3 }
 0x1f1   : > { %p890_p0 = scmp.lt.u32.totalorder %s888_s6, %s884_s22  ;;  %p892_p2 = scmp.lt.u32.totalorder %s884_s22, %s1203_s17 }
 0x1f2   : > { %p886_p11 = pnand %p885_p10, %p1086_p5 }
 0x1f3   : > { %p891_p1 = por %p890_p0, %p889_p13 }
 0x1f4   : > { %p887_p12 = pneg %p886_p11 }
 0x1f5   : > { %p893_p3 = por %p892_p2, %p891_p1 }
 0x1f7   : > { %p894_p4 = pnand %p893_p3, %p887_p12 }
 0x1f9   : > { %897 = shalt.err (!%p894_p4)
}
 0x1fa   : > { %s1010_s10 = smov 128   ;;  %s1011_s9 = smov 8   ;;  %464 = vst [vmem:[%s1173_s7 + $0x30] sm:$0xff] %v460_v47  ;;  %465 = vst [vmem:[%s1173_s7 + $0x38] sm:$0xff] %v461_v48 }
 0x1fb   : > { %760 = dma.vmem_to_hbm [thread:$0]  (%p1086_p5), %s1256_s26, 256, %s1203_s17, %s1338_s11, %s1010_s10, %s1010_s10, %s1011_s9  }
 0x1fc   : > { %s496_s22 = scalar_lea.sflag [#allocation8], %s1148_s14  ;;  %s898_s23 = scalar_lea.vmem %s1319_s15, 512 }
 0x1fd   : > { %p899_p7 = scmp.ne.s32.totalorder %s1319_s15, %s898_s23  ;;  %s1012_s30 = smov [#allocation7]  }
 0x1fe   : > { %s902_s6 = sshll.u32 %s1012_s30, 4  ;;  %s903_s6 = int_to_ptr.vmem [resolvable:$false] %s902_s6 }
 0x1ff   : > { %p900_p8 = pnand %p899_p7, %p1086_p5  ;;  %s904_s25 = scalar_lea.vmem %s903_s6, 1024 }
 0x200   : > { %p905_p10 = scmp.lt.s32.totalorder %s1319_s15, %s903_s6  ;;  %p906_p11 = scmp.lt.s32.totalorder %s904_s25, %s898_s23 }
 0x201   : > { %p901_p9 = pneg %p900_p8 }
 0x202   : > { %p907_p12 = por %p906_p11, %p905_p10 }
 0x204   : > { %p908_p13 = pnand %p907_p12, %p901_p9 }
 0x206   : > { %911 = shalt.err (!%p908_p13)
}
 0x207   : > { %s912_s7 = scalar_lea.hbm %s1315_s12, 512  ;;  %s916_s16 = scalar_lea.hbm %s1437_s5, 1024 }
 0x208   : > { %p913_p0 = scmp.ne.s32.totalorder %s1315_s12, %s912_s7  ;;  %p917_p3 = scmp.lt.u32.totalorder %s1315_s12, %s1437_s5 }
 0x209   : > { %p918_p4 = scmp.lt.u32.totalorder %s916_s16, %s912_s7  ;;  %p920_p8 = scmp.lt.u32.totalorder %s912_s7, %s1315_s12 }
 0x20a   : > { %p914_p1 = pnand %p913_p0, %p1086_p5 }
 0x20b   : > { %p919_p7 = por %p918_p4, %p917_p3 }
 0x20c   : > { %p915_p2 = pneg %p914_p1 }
 0x20d   : > { %p921_p9 = por %p920_p8, %p919_p7 }
 0x20f   : > { %p922_p10 = pnand %p921_p9, %p915_p2 }
 0x211   : > { %925 = shalt.err (!%p922_p10)
}
 0x212   : > { %s1454_s23 = smov 256   ;;  %s926_s30 = scalar_lea.vmem %s1188_s8, 1024 }
 0x213   : > { %762 = dma.vmem_to_hbm [thread:$0]  (%p1086_p5), %s1319_s15, 512, %s1315_s12, %s496_s22, %s1454_s23, %s1454_s23, %s1008_s0  }
 0x214   : > { %p927_p11 = scmp.ne.s32.totalorder %s1188_s8, %s926_s30  ;;  %s1013_s6 = smov [#allocation6]  }
 0x215   : > { %s930_s25 = sshll.u32 %s1013_s6, 4  ;;  %s931_s25 = int_to_ptr.vmem [resolvable:$false] %s930_s25 }
 0x216   : > { %p928_p12 = pnand %p927_p11, %p1086_p5  ;;  %s932_s7 = scalar_lea.vmem %s931_s25, 2048 }
 0x217   : > { %p933_p0 = scmp.lt.s32.totalorder %s1188_s8, %s931_s25  ;;  %p934_p1 = scmp.lt.s32.totalorder %s932_s7, %s926_s30 }
 0x218   : > { %p929_p13 = pneg %p928_p12 }
 0x219   : > { %p935_p2 = por %p934_p1, %p933_p0 }
 0x21b   : > { %p936_p3 = pnand %p935_p2, %p929_p13 }
 0x21d   : > { %939 = shalt.err (!%p936_p3)
}
 0x21e   : > { %s940_s14 = scalar_lea.hbm %s1330_s13, 1024  ;;  %s944_s15 = scalar_lea.hbm %s1436_s4, 2048 }
 0x21f   : > { %p941_p4 = scmp.ne.s32.totalorder %s1330_s13, %s940_s14  ;;  %p945_p9 = scmp.lt.u32.totalorder %s1330_s13, %s1436_s4 }
 0x220   : > { %p946_p10 = scmp.lt.u32.totalorder %s944_s15, %s940_s14  ;;  %p948_p12 = scmp.lt.u32.totalorder %s940_s14, %s1330_s13 }
 0x221   : > { %p942_p7 = pnand %p941_p4, %p1086_p5 }
 0x222   : > { %p947_p11 = por %p946_p10, %p945_p9 }
 0x223   : > { %p943_p8 = pneg %p942_p7 }
 0x224   : > { %p949_p13 = por %p948_p12, %p947_p11 }
 0x226   : > { %p950_p0 = pnand %p949_p13, %p943_p8 }
 0x228   : > { %953 = shalt.err (!%p950_p0)
}
 0x229   : > { %s1014_s26 = smov 512   ;;  %s1015_s16 = smov 32  }
 0x22a   : > { %761 = dma.vmem_to_hbm [thread:$0]  (%p1086_p5), %s1188_s8, 1024, %s1330_s13, %s1338_s11, %s1014_s26, %s1014_s26, %s1015_s16  }
 0x22b PF: > { %p780_p1 = scmp.ge.s32.totalorder %s996_s21, 2  ;;  %s576_s10 = sand.u32 1, %s984_s18  }
 0x22c   : > { %s577_s9 = scalar_lea.sflag [#allocation3], %s576_s10 }
 0x22d   : > { %p768_p2 = pnand %p780_p1, %p1090_p6 }
 0x22f   : > { %971 = dma.done.wait (!%p768_p2), %s577_s9, 512  }
 0x230   : > { %973 = vsyncadd (!%p768_p2), %s577_s9, 4294966784  ;;  %s1455_s23 = sadd.s32 4294967294, %s996_s21  }
 0x231   : > { %s585_s30 = sand.u32 1, %s1455_s23  }
 0x232   : > { %s586_s6 = scalar_lea.sflag [#allocation5], %s585_s30 }
 0x233   : > { %975 = dma.done.wait (!%p768_p2), %s586_s6, 1280  }
 0x234   : > { %977 = vsyncadd (!%p768_p2), %s586_s6, 4294966016  ;;  %s604_s25 = scalar_lea.sflag [#allocation8], %s576_s10 }
 0x235   : > { %979 = dma.done.wait (!%p768_p2), %s604_s25, 512  }
 0x236   : > { %981 = vsyncadd (!%p768_p2), %s604_s25, 4294966784  ;;  %p22_p5 = scmp.ge.s32.totalorder %s1071_s24, 4   ;;  %s1456_s18 = smov %s988_s19 }
 0x237   : > { %s1457_s19 = smov %s992_s20  ;;  %s1458_s20 = smov %s1084_s27 }
 0x238   : > { %s1459_s21 = smov %s1071_s24  ;;  %24 = sbr.rel (!%p22_p5) target bundleno = 9 (0x9), region = 115 }
 0x23f   :  { %609 = vsyncpa [#allocation3], 1 }
 0x240   :  { %611 = vsyncpa [#allocation3 + $0x1], 1 }
 0x241   :  { %612 = vsyncpa [#allocation5], 1 }
 0x242   :  { %614 = vsyncpa [#allocation5 + $0x1], 1 }
 0x243   :  { %615 = vsyncpa [#allocation8], 1 }
 0x244   :  { %617 = vsyncpa [#allocation8 + $0x1], 1 }

</bundles_post_ra>
